<compile_context>
chip_gen: v5e
topology: v5e:2x2
jax: 0.10.0
libtpu: 0.0.40
codegen_flags: <defaults>
</compile_context>

<pallas_src>
import functools

import jax
import jax.numpy as jnp
from jax.experimental import pallas as pl
from jax.experimental.pallas import tpu as pltpu

NEG_SLOPE = 0.01  # torch.nn.LeakyReLU default


def _qlayer_kernel(emb_ref, w6t_ref, w7t_ref, w5a_ref, w5b_ref, out_ref,
                   *, tb, n, inv_n):
    e = emb_ref.shape[-1]
    tbn = tb * n

    emb3d = emb_ref[...]                       # (TB, N, E)   matmul dtype
    emb2d = emb3d.reshape(tbn, e)              # (TB*N, E)    rows for theta7

    # Per-graph sum over nodes (torch: embeddings.sum(dim=1)), f32 accumulate,
    # optional 1/N normalization.
    s = jnp.sum(emb3d.astype(jnp.float32), axis=1) * inv_n        # (TB, E)

    # theta6 / theta7 -> single MXU matmuls with f32 accumulation.
    x6 = jnp.dot(s.astype(emb3d.dtype), w6t_ref[...],
                 preferred_element_type=jnp.float32)              # (TB, E)
    x7 = jnp.dot(emb2d, w7t_ref[...],
                 preferred_element_type=jnp.float32)              # (TB*N, E)

    # LeakyReLU in f32 on the VPU. Splitting theta5 into its x6- / x7-halves
    # before the elementwise nonlinearity is equivalent to concat-then-linear.
    f6 = jnp.where(x6 > 0, x6, NEG_SLOPE * x6)                    # (TB, E)
    f7 = jnp.where(x7 > 0, x7, NEG_SLOPE * x7)                    # (TB*N, E)

    # theta5 (single output column): VPU multiply + lane reduce, not an MXU dot.
    q6 = jnp.sum(f6 * w5a_ref[...], axis=-1, keepdims=True)       # (TB, 1)
    q7 = jnp.sum(f7 * w5b_ref[...], axis=-1, keepdims=True)       # (TB*N, 1)

    out2d = q7.reshape(tb, n) + q6                                # (TB, N)
    # Lane-dense store: one (TB*N)-wide row per grid step.
    out_ref[0, :] = out2d.reshape(tbn).astype(out_ref.dtype)


def qlayer_forward(embeddings, w5, w6, w7, *, normalize=False,
                   matmul_dtype=jnp.float32, tb=None):
    """embeddings: (B, N, E); w5: (1, 2E); w6, w7: (E, E).

    matmul_dtype: jnp.float32 (default, exact) or jnp.bfloat16 (recommended on
    v6e/v7x: halves HBM DMA bytes, uses the bf16 MXU; elementwise stays f32).
    """
    B, N, E = embeddings.shape
    assert w5.shape == (1, 2 * E)
    assert w6.shape == (E, E) and w7.shape == (E, E)

    # Pre-transpose so the kernel computes x @ W (nn.Linear is x @ W^T).
    w6t = jnp.asarray(w6).T.astype(matmul_dtype)                  # (E, E)
    w7t = jnp.asarray(w7).T.astype(matmul_dtype)                  # (E, E)
    # theta5 split into its x6-half / x7-half as (1, E) rows; kept f32 for the
    # VPU path (v5e has no bf16 VPU).
    w5a = jnp.asarray(w5[:, :E], jnp.float32)                     # (1, E)
    w5b = jnp.asarray(w5[:, E:], jnp.float32)                     # (1, E)

    # Batch-tile size: enough rows to fill the MXU M dimension (>=256 rows for
    # v6e/v7x, also saturates v5e's 128-wide MXU), capped so the (double
    # buffered) embedding block stays comfortably inside scoped VMEM even on
    # v7x's 64 MiB VMEM.
    if tb is None:
        tb = max(1, pl.cdiv(256, N))
        bytes_per_graph = N * E * jnp.dtype(matmul_dtype).itemsize
        tb = min(tb, max(1, (8 * 1024 * 1024) // bytes_per_graph), B)
    num_blocks = pl.cdiv(B, tb)
    b_pad = num_blocks * tb

    emb = embeddings.astype(matmul_dtype)
    if b_pad != B:
        # Zero-padded graphs produce zero Q values and are sliced off below.
        emb = jnp.pad(emb, ((0, b_pad - B), (0, 0), (0, 0)))

    kernel = functools.partial(
        _qlayer_kernel, tb=tb, n=N, inv_n=(1.0 / N) if normalize else 1.0)

    out = pl.pallas_call(
        kernel,
        out_shape=jax.ShapeDtypeStruct((num_blocks, tb * N), jnp.float32),
        grid_spec=pltpu.PrefetchScalarGridSpec(
            num_scalar_prefetch=0,
            grid=(num_blocks,),
            in_specs=[
                pl.BlockSpec((tb, N, E), lambda g: (g, 0, 0)),    # embeddings
                pl.BlockSpec((E, E), lambda g: (0, 0)),           # W6^T
                pl.BlockSpec((E, E), lambda g: (0, 0)),           # W7^T
                pl.BlockSpec((1, E), lambda g: (0, 0)),           # W5 x6-half
                pl.BlockSpec((1, E), lambda g: (0, 0)),           # W5 x7-half
            ],
            out_specs=pl.BlockSpec((1, tb * N), lambda g: (g, 0)),
        ),
        compiler_params=pltpu.CompilerParams(
            dimension_semantics=("parallel",),   # shards blocks across v7x TCs
        ),
    )(emb, w6t, w7t, w5a, w5b)

    return out.reshape(b_pad, N)[:B]


def qlayer_reference(embeddings, w5, w6, w7, *, normalize=False):
    """Pure-JAX reference mirroring the PyTorch forward."""
    B, N, E = embeddings.shape
    s = embeddings.sum(axis=1)
    if normalize:
        s = s / N
    x6 = s @ w6.T                                       # (B, E)
    x6_rep = jnp.broadcast_to(x6[:, None, :], (B, N, E))
    x7 = embeddings @ w7.T                              # (B, N, E)
    feats = jnp.concatenate([x6_rep, x7], axis=-1)      # (B, N, 2E)
    feats = jnp.where(feats > 0, feats, NEG_SLOPE * feats)
    out = feats @ w5.T                                  # (B, N, 1)
    return out[..., 0]


if __name__ == "__main__":
    key = jax.random.PRNGKey(0)
    B, N, E = 2, 8, 32  # batch, num_nodes, embed_dim

    k_emb, k5, k6, k7 = jax.random.split(key, 4)
    embeddings = jax.random.normal(k_emb, (B, N, E), dtype=jnp.float32)

    # Deterministic parameter init (PyTorch-like uniform(-1/sqrt(fan_in), +)).
    b5 = 1.0 / jnp.sqrt(2.0 * E)
    b67 = 1.0 / jnp.sqrt(float(E))
    w5 = jax.random.uniform(k5, (1, 2 * E), minval=-b5, maxval=b5, dtype=jnp.float32)
    w6 = jax.random.uniform(k6, (E, E), minval=-b67, maxval=b67, dtype=jnp.float32)
    w7 = jax.random.uniform(k7, (E, E), minval=-b67, maxval=b67, dtype=jnp.float32)

    # f32 path (exact vs. reference).
    out = qlayer_forward(embeddings, w5, w6, w7, normalize=False)
    out = jax.block_until_ready(out)
    ref = qlayer_reference(embeddings, w5, w6, w7, normalize=False)
    assert out.shape == (B, N), out.shape
    assert jnp.allclose(out, ref, atol=1e-4, rtol=1e-4), (
        float(jnp.max(jnp.abs(out - ref))))

    # Multi-block grid + batch padding + normalize=True path.
    B2 = 5
    emb2 = jax.random.normal(jax.random.PRNGKey(1), (B2, N, E), dtype=jnp.float32)
    out2 = jax.block_until_ready(
        qlayer_forward(emb2, w5, w6, w7, normalize=True, tb=2))
    ref2 = qlayer_reference(emb2, w5, w6, w7, normalize=True)
    assert out2.shape == (B2, N)
    assert jnp.allclose(out2, ref2, atol=1e-4, rtol=1e-4), (
        float(jnp.max(jnp.abs(out2 - ref2))))

    # bf16 matmul-input path (v6e/v7x recommendation) — looser tolerance.
    out_bf = jax.block_until_ready(
        qlayer_forward(embeddings, w5, w6, w7, matmul_dtype=jnp.bfloat16))
    assert jnp.allclose(out_bf, ref, atol=5e-2, rtol=5e-2), (
        float(jnp.max(jnp.abs(out_bf - ref))))

    print("KERNEL_OK")
</pallas_src>

<mosaic_0001>
module attributes {stable_mosaic.version = 11 : i64} {
  func.func @_qlayer_kernel(%arg0: i32, %arg1: memref<2x8x32xf32, #tpu.memory_space<vmem>>, %arg2: memref<32x32xf32, #tpu.memory_space<vmem>>, %arg3: memref<32x32xf32, #tpu.memory_space<vmem>>, %arg4: memref<1x32xf32, #tpu.memory_space<vmem>>, %arg5: memref<1x32xf32, #tpu.memory_space<vmem>>, %arg6: memref<1x16xf32, #tpu.memory_space<vmem>>) attributes {dimension_semantics = [#tpu.dimension_semantics<parallel>], iteration_bounds = array<i64: 1>, scalar_prefetch = 0 : i64, scratch_operands = 0 : i64, tpu.core_type = #tpu.core_type<tc>, window_params = [{transform_indices = @transform_0, window_bounds = array<i64: 2, 8, 32>}, {pipeline_mode = #tpu.pipeline_mode<synchronous>, transform_indices = @transform_1, window_bounds = array<i64: 32, 32>}, {pipeline_mode = #tpu.pipeline_mode<synchronous>, transform_indices = @transform_2, window_bounds = array<i64: 32, 32>}, {pipeline_mode = #tpu.pipeline_mode<synchronous>, transform_indices = @transform_3, window_bounds = array<i64: 1, 32>}, {pipeline_mode = #tpu.pipeline_mode<synchronous>, transform_indices = @transform_4, window_bounds = array<i64: 1, 32>}, {transform_indices = @transform_5, window_bounds = array<i64: 1, 16>}]} {
    %c0 = arith.constant 0 : index
    %c0_0 = arith.constant 0 : index
    %c0_1 = arith.constant 0 : index
    %0 = vector.load %arg1[%c0, %c0_0, %c0_1] : memref<2x8x32xf32, #tpu.memory_space<vmem>>, vector<2x8x32xf32>
    %1 = vector.shape_cast %0 : vector<2x8x32xf32> to vector<16x32xf32>
    %cst = arith.constant dense<0.000000e+00> : vector<2x32xf32>
    %2 = vector.multi_reduction <add>, %0, %cst [1] : vector<2x8x32xf32> to vector<2x32xf32>
    %cst_2 = arith.constant 1.000000e+00 : f32
    %3 = vector.broadcast %cst_2 : f32 to vector<2x32xf32>
    %4 = arith.mulf %2, %3 : vector<2x32xf32>
    %c0_3 = arith.constant 0 : index
    %c0_4 = arith.constant 0 : index
    %5 = vector.load %arg2[%c0_3, %c0_4] : memref<32x32xf32, #tpu.memory_space<vmem>>, vector<32x32xf32>
    %cst_5 = arith.constant dense<0.000000e+00> : vector<2x32xf32>
    %6 = tpu.matmul %4, %5, %cst_5 {dimension_numbers = #tpu.dot_dimension_numbers<[1], [0], [0], [1], [0, 0, 1, 1], [], []>} : vector<2x32xf32>, vector<32x32xf32>, vector<2x32xf32> -> vector<2x32xf32>
    %c0_6 = arith.constant 0 : index
    %c0_7 = arith.constant 0 : index
    %7 = vector.load %arg3[%c0_6, %c0_7] : memref<32x32xf32, #tpu.memory_space<vmem>>, vector<32x32xf32>
    %cst_8 = arith.constant dense<0.000000e+00> : vector<16x32xf32>
    %8 = tpu.matmul %1, %7, %cst_8 {dimension_numbers = #tpu.dot_dimension_numbers<[1], [0], [0], [1], [0, 0, 1, 1], [], []>} : vector<16x32xf32>, vector<32x32xf32>, vector<16x32xf32> -> vector<16x32xf32>
    %cst_9 = arith.constant 0.000000e+00 : f32
    %9 = vector.broadcast %cst_9 : f32 to vector<2x32xf32>
    %10 = arith.cmpf ogt, %6, %9 : vector<2x32xf32>
    %cst_10 = arith.constant 0.00999999977 : f32
    %11 = vector.broadcast %cst_10 : f32 to vector<2x32xf32>
    %12 = arith.mulf %11, %6 : vector<2x32xf32>
    %13 = arith.select %10, %6, %12 : vector<2x32xi1>, vector<2x32xf32>
    %cst_11 = arith.constant 0.000000e+00 : f32
    %14 = vector.broadcast %cst_11 : f32 to vector<16x32xf32>
    %15 = arith.cmpf ogt, %8, %14 : vector<16x32xf32>
    %cst_12 = arith.constant 0.00999999977 : f32
    %16 = vector.broadcast %cst_12 : f32 to vector<16x32xf32>
    %17 = arith.mulf %16, %8 : vector<16x32xf32>
    %18 = arith.select %15, %8, %17 : vector<16x32xi1>, vector<16x32xf32>
    %c0_13 = arith.constant 0 : index
    %c0_14 = arith.constant 0 : index
    %19 = vector.load %arg4[%c0_13, %c0_14] : memref<1x32xf32, #tpu.memory_space<vmem>>, vector<1x32xf32>
    %20 = vector.broadcast %19 : vector<1x32xf32> to vector<2x32xf32>
    %21 = arith.mulf %13, %20 : vector<2x32xf32>
    %cst_15 = arith.constant dense<0.000000e+00> : vector<2xf32>
    %22 = vector.multi_reduction <add>, %21, %cst_15 [1] : vector<2x32xf32> to vector<2xf32>
    %23 = vector.shape_cast %22 : vector<2xf32> to vector<2x1xf32>
    %c0_16 = arith.constant 0 : index
    %c0_17 = arith.constant 0 : index
    %24 = vector.load %arg5[%c0_16, %c0_17] : memref<1x32xf32, #tpu.memory_space<vmem>>, vector<1x32xf32>
    %25 = vector.broadcast %24 : vector<1x32xf32> to vector<16x32xf32>
    %26 = arith.mulf %18, %25 : vector<16x32xf32>
    %cst_18 = arith.constant dense<0.000000e+00> : vector<16xf32>
    %27 = vector.multi_reduction <add>, %26, %cst_18 [1] : vector<16x32xf32> to vector<16xf32>
    %28 = vector.shape_cast %27 : vector<16xf32> to vector<16x1xf32>
    %29 = vector.shape_cast %28 : vector<16x1xf32> to vector<2x8xf32>
    %30 = vector.broadcast %23 : vector<2x1xf32> to vector<2x8xf32>
    %31 = arith.addf %29, %30 : vector<2x8xf32>
    %32 = vector.shape_cast %31 : vector<2x8xf32> to vector<16xf32>
    %c0_19 = arith.constant 0 : index
    %c0_20 = arith.constant 0 : index
    %33 = vector.load %arg6[%c0_19, %c0_20] : memref<1x16xf32, #tpu.memory_space<vmem>>, vector<1x16xf32>
    %34 = vector.shape_cast %33 : vector<1x16xf32> to vector<16xf32>
    %35 = vector.shape_cast %32 : vector<16xf32> to vector<1x16xf32>
    tpu.vector_store %arg6[%c0_19, %c0_20], %35 {strides = array<i32>} : memref<1x16xf32, #tpu.memory_space<vmem>>, vector<1x16xf32>,
    return
  }
  func.func @transform_0(%arg0: i32) -> (i32, i32, i32) {
    %c0_i32 = arith.constant 0 : i32
    %c0_i32_0 = arith.constant 0 : i32
    %c0_i32_1 = arith.constant 0 : i32
    return %arg0, %c0_i32, %c0_i32_0 : i32, i32, i32
  }
  func.func @transform_1(%arg0: i32) -> (i32, i32) {
    %c0_i32 = arith.constant 0 : i32
    %c0_i32_0 = arith.constant 0 : i32
    %c0_i32_1 = arith.constant 0 : i32
    return %c0_i32, %c0_i32_0 : i32, i32
  }
  func.func @transform_2(%arg0: i32) -> (i32, i32) {
    %c0_i32 = arith.constant 0 : i32
    %c0_i32_0 = arith.constant 0 : i32
    %c0_i32_1 = arith.constant 0 : i32
    return %c0_i32, %c0_i32_0 : i32, i32
  }
  func.func @transform_3(%arg0: i32) -> (i32, i32) {
    %c0_i32 = arith.constant 0 : i32
    %c0_i32_0 = arith.constant 0 : i32
    %c0_i32_1 = arith.constant 0 : i32
    return %c0_i32, %c0_i32_0 : i32, i32
  }
  func.func @transform_4(%arg0: i32) -> (i32, i32) {
    %c0_i32 = arith.constant 0 : i32
    %c0_i32_0 = arith.constant 0 : i32
    %c0_i32_1 = arith.constant 0 : i32
    return %c0_i32, %c0_i32_0 : i32, i32
  }
  func.func @transform_5(%arg0: i32) -> (i32, i32) {
    %c0_i32 = arith.constant 0 : i32
    %c0_i32_0 = arith.constant 0 : i32
    return %arg0, %c0_i32 : i32, i32
  }
}

</mosaic_0001>

<bundles_post_ra>
// kernel: tpu_custom_call.1
= control target key start
LH: loop header
LB: loop body
LE: loop exit
PB: predicated region body
PF: predicated region fallthrough
CT: control target
= control target key end

     0   :  { %10 = vsyncpa [#allocation3], 0  ;;  %s404_s0 = inlined_call_operand.hbm [shape: f32[2,8,32], index: 0, kind: input, shape index: {}]   ;;  %s405_s1 = inlined_call_operand.hbm [shape: f32[32,32], index: 1, kind: input, shape index: {}]   ;;  %s406_s2 = inlined_call_operand.hbm [shape: f32[32,32], index: 2, kind: input, shape index: {}]   ;;  %s407_s3 = inlined_call_operand.vmem [shape: f32[1,32], index: 3, kind: input, shape index: {}]   ;;  %s408_s4 = inlined_call_operand.vmem [shape: f32[1,32], index: 4, kind: input, shape index: {}]   ;;  %s409_s5 = inlined_call_operand.hbm [shape: f32[1,16], index: 5, kind: output, shape index: {}]  }
   0x1   :  { %11 = vsyncpa [#allocation6], 0 }
   0x2   :  { %12 = vsyncpa [#allocation4], 0  ;;  %s30_s20 = sshll.u32 %s405_s1, 4  ;;  %s342_s21 = smov [#allocation5]   ;;  %s31_s20 = int_to_ptr.hbm [resolvable:$true] %s30_s20 }
   0x3   :  { %s32_s22 = sshll.u32 %s342_s21, 4  ;;  %s17_s25 = sshll.u32 %s404_s0, 4  ;;  %s33_s22 = int_to_ptr.vmem [resolvable:$true] %s32_s22  ;;  %s18_s25 = int_to_ptr.hbm [resolvable:$true] %s17_s25 }
   0x4   :  { %s343_s26 = smov 128   ;;  %s344_s27 = smov 8  }
   0x5   :  { %38 = dma.hbm_to_vmem [thread:$0]  %s31_s20, 512, %s33_s22, [#allocation6], %s343_s26, %s343_s26, %s344_s27  }
   0x6   :  { %s345_s28 = smov [#allocation2]   ;;  %s43_s7 = sshll.u32 %s406_s2, 4  ;;  %s44_s7 = int_to_ptr.hbm [resolvable:$true] %s43_s7 }
   0x7   :  { %s19_s29 = sshll.u32 %s345_s28, 4  ;;  %s346_s1 = smov [#allocation7]   ;;  %s20_s29 = int_to_ptr.vmem [resolvable:$true] %s19_s29 }
   0x8   :  { %25 = dma.hbm_to_vmem [thread:$0]  %s18_s25, 256, %s20_s29, [#allocation3], %s343_s26, %s343_s26, %s344_s27  }
   0x9   :  { %s45_s8 = sshll.u32 %s346_s1, 4  ;;  %s46_s8 = int_to_ptr.vmem [resolvable:$true] %s45_s8 }
   0xa   :  { %51 = dma.hbm_to_vmem [thread:$0]  %s44_s7, 512, %s46_s8, [#allocation6], %s343_s26, %s343_s26, %s344_s27  }
   0xb   :  { %336 = dma.done.wait [#allocation3], 256  }
   0xc   :  { %337 = vsyncadd [#allocation3], 4294967040 }
   0xd   :  { %338 = dma.done.wait [#allocation6], 1024  }
   0xe   :  { %339 = vsyncadd [#allocation6], 4294966272  ;;  %v118_v0 = vld [vmem:[#allocation7 + $0x18] sm:$0xff]  ;;  %v117_v1 = vld [vmem:[#allocation7 + $0x10] sm:$0xff]  ;;  %vm70_vm0 = vcmask 261120   ;;  %vm91_vm1 = vcmask 1041409   ;;  %v193_v50 = vlaneseq }
   0xf   :  { %v88_v2 = vld [vmem:[#allocation5 + $0x18] sm:$0xff]  ;;  %224 = vmatpush.msra.mxu2 %v118_v0  ;;  %v87_v3 = vld [vmem:[#allocation5 + $0x10] sm:$0xff]  ;;  %v116_v4 = vld [vmem:[#allocation7 + $0x8] sm:$0xff]  ;;  %137 = vmatpush.msra.mxu1 %v118_v0  ;;  %vm162_vm4 = vcmask 254976   ;;  %v347_v42 = vmov 0   ;;  %s210_s13 = sshll.u32 %s409_s5, 4  ;;  %s211_s13 = int_to_ptr.hbm [resolvable:$true] %s210_s13 }
  0x10   :  { %107 = vmatpush.msra.mxu0 %v88_v2  ;;  %v69_v5 = vld [vmem:[#allocation2 + $0x8] sm:$0xff]  ;;  %v86_v6 = vld [vmem:[#allocation5 + $0x8] sm:$0xff]  ;;  %v68_v8 = vld [vmem:[#allocation2] sm:$0xff]  ;;  %236 = vset.pattern.permute.xlu2 %v347_v42  ;;  %v194_v51 = vand.u32 127, %v193_v50  ;;  %vm198_vm6 = vcmask 130112   ;;  %vm201_vm7 = vcmask 122880  }
  0x11   :  { %225 = vmatpush.msra.mxu2 %v117_v1  ;;  %v78_v7 = vsel %vm70_vm0, %v69_v5, 0.0  ;;  %v115_v9 = vld [vmem:[#allocation7] sm:$0xff]  ;;  %v71_v12 = vsel %vm70_vm0, %v68_v8, 0.0  ;;  %138 = vmatpush.msra.mxu1 %v117_v1  ;;  %v239_v26 = vld [vmem:[%s408_s4] ss:$0 sm:$0xff] }
  0x12   :  { %108 = vmatpush.msra.mxu0 %v87_v3  ;;  %v79_v10 = vrot.slane %v78_v7, 4  ;;  %v85_v11 = vld [vmem:[#allocation5] sm:$0xff]  ;;  %v72_v13 = vrot.slane %v71_v12, 4  ;;  %v238_v31 = vld [vmem:[%s407_s3] ss:$0 sm:$0xff]  ;;  %235 = vset.pattern.permute.xlu1 %v347_v42  ;;  %v196_v52 = vadd.s32 4294967288, %v194_v51 }
  0x13   :  { %226 = vmatpush.msra.mxu2 %v116_v4  ;;  %139 = vmatpush.msra.mxu1 %v116_v4  ;;  %s348_s3 = smov [#allocation8]  }
  0x14   :  { %109 = vmatpush.msra.mxu0 %v86_v6  ;;  %v80_v14 = vadd.f32 %v79_v10, %v78_v7  ;;  %v73_v15 = vadd.f32 %v72_v13, %v71_v12  ;;  %237 = vset.pattern.permute.xlu0 %v347_v42  ;;  %s208_s4 = sshll.u32 %s348_s3, 4  ;;  %s209_s4 = int_to_ptr.vmem [resolvable:$true] %s208_s4 }
  0x15   :  { %227 = vmatpush.msra.mxu2 %v115_v9  ;;  %140 = vmatpush.msra.mxu1 %v115_v9 }
  0x16   :  { %110 = vmatpush.msra.mxu0 %v85_v11  ;;  %v81_v16 = vrot.slane %v80_v14, 2  ;;  %223 = vmatmul.msk.f32.vlgmr.msra.gmra.mxu2 %vm70_vm0, %v69_v5  ;;  %v74_v17 = vrot.slane %v73_v15, 2 }
  0x17   :  { %222 = vmatmul.msk.f32.vlgmr.msra.gmra.mxu1 %vm70_vm0, %v68_v8 }
  0x18   :  { %v82_v18 = vadd.f32 %v81_v16, %v80_v14  ;;  %v75_v19 = vadd.f32 %v74_v17, %v73_v15 }
  0x1a   :  { %v83_v20 = vrot.slane %v82_v18, 1  ;;  %v76_v21 = vrot.slane %v75_v19, 1 }
  0x1c   :  { %v84_v22 = vadd.f32 %v83_v20, %v82_v18  ;;  %v77_v23 = vadd.f32 %v76_v21, %v75_v19 }
  0x1e   :  { %v92_v24 = vsel %vm91_vm1, %v84_v22, %v77_v23 }
  0x1f   :  { %221 = vmatmul.msk.f32.vlgmr.msra.gmra.mxu0 %vm70_vm0, %v92_v24 }
  0x94   :  { %v142_v30 = vpop.f32.mrf.mxu1 }
  0x95   :  { %v153_v36 = vmul.f32 0.01, %v142_v30  ;;  %vm151_vm5 = vcmp.gt.f32.partialorder %v142_v30, 0.0 }
  0x97   :  { %v155_v39 = vsel %vm151_vm5, %v142_v30, %v153_v36 }
  0x98   :  { %v170_v40 = vmul.f32 %v239_v26, %v155_v39 }
  0x99   :  { %v145_v25 = vpop.f32.mrf.mxu2 }
  0x9a   :  { %vm152_vm2 = vcmp.gt.f32.partialorder %v145_v25, 0.0  ;;  %v154_v27 = vmul.f32 0.01, %v145_v25  ;;  %v172_v41 = vsel %vm70_vm0, %v170_v40, 0.0 }
  0x9c   :  { %v156_v28 = vsel %vm152_vm2, %v145_v25, %v154_v27  ;;  %v112_v29 = vpop.f32.mrf.mxu0 }
  0x9d   :  { %v171_v32 = vmul.f32 %v239_v26, %v156_v28  ;;  %vm148_vm3 = vcmp.gt.f32.partialorder %v112_v29, 0.0  ;;  %v149_v33 = vmul.f32 0.01, %v112_v29 }
  0x9f   :  { %v175_v34 = vsel %vm70_vm0, %v171_v32, 0.0  ;;  %v150_v35 = vsel %vm148_vm3, %v112_v29, %v149_v33 }
  0xa0   :  { %176 = vadd.xlane.f32.xlu1 %v175_v34  ;;  %v161_v37 = vmul.f32 %v238_v31, %v150_v35 }
  0xa2   :  { %v163_v38 = vsel %vm162_vm4, %v161_v37, 0.0 }
  0xa3   :  { %164 = vadd.xlane.f32.xlu0 %v163_v38 }
  0xab   :  { %173 = vadd.xlane.f32.xlu0 %v172_v41 }
 0x113   :  { %v177_v44 = vpop.xlane.xlu1 %176 }
 0x116   :  { %v165_v43 = vpop.xlane.xlu0 %164 }
 0x117   :  { %v180_v45 = vperm.slane %v165_v43, 1  ;;  %v179_v47 = vperm.slane %v165_v43, 0 }
 0x119   :  { %v184_v46 = vadd.f32 %v180_v45, %v177_v44 }
 0x11b   :  { %191 = vperm.xlu2 %236, %v184_v46  }
 0x11e   :  { %v174_v48 = vpop.xlane.xlu0 %173 }
 0x11f   :  { %v183_v49 = vadd.f32 %v179_v47, %v174_v48 }
 0x121   :  { %188 = vperm.xlu1 %235, %v183_v49  }
 0x175   :  { %v192_v53 = vpop.permute.xlu2 %191 }
 0x176   :  { %v197_v55 = vperm.slane %v192_v53, %v196_v52 }
 0x193   :  { %v189_v54 = vpop.permute.xlu1 %188 }
 0x194   :  { %v195_v56 = vperm.slane %v189_v54, %v194_v51 }
 0x196   :  { %v199_v57 = vsel %vm198_vm6, %v197_v55, %v195_v56 }
 0x197   :  { %202 = vst.msk [vmem:[#allocation8] sm:$0x1] %vm201_vm7, %v199_v57 }
 0x198   :  { %213 = dma.vmem_to_hbm [thread:$0]  %s209_s4, 16, %s211_s13, [#allocation4]  }
 0x199   :  { %340 = dma.done.wait [#allocation4], 16  }
 0x19a   :  { %341 = vsyncadd [#allocation4], 4294967280 }
 0x19b   :  { %218 = vsyncpa [#allocation3], 1 }
 0x19c   :  { %219 = vsyncpa [#allocation6], 1 }
 0x19d   :  { %220 = vsyncpa [#allocation4], 1 }

</bundles_post_ra>
